<compile_context>
chip_gen: v7x
topology: tpu7x:2x2x1
jax: 0.10.0
libtpu: 0.0.40
codegen_flags: <defaults>
</compile_context>

<pallas_src>
import functools

import jax
import jax.numpy as jnp
from jax.experimental import pallas as pl
from jax.experimental.pallas import tpu as pltpu


def _ce_kernel(logits_ref, labels_ref, out_ref, *, batch, tb):
    """Partial cross-entropy for one (tb, C) batch tile.

    Produces a lane-dense (1, C) partial sum (rows reduced, lanes kept); the single
    cross-lane reduction happens once in the JAX wrapper. One distinct output block
    per grid step keeps the grid axis fully parallel.
    """
    i = pl.program_id(0)

    # Logits cast folds into the first consuming pass; labels stay in HBM dtype
    # until the final multiply.
    x = logits_ref[...].astype(jnp.float32)                     # (tb, C)

    # Numerically-stable log-softmax pieces along the class (lane) axis.
    m = jnp.max(x, axis=-1, keepdims=True)                      # (tb, 1)
    s = jnp.sum(jnp.exp(x - m), axis=-1, keepdims=True)         # (tb, 1); exp(x-m) transient
    lpm = jnp.log(s) + m                                        # lse + m, (tb, 1)

    # -y * log_softmax(x) == y * ((lse + m) - x).
    contrib = labels_ref[...].astype(jnp.float32) * (lpm - x)   # (tb, C)

    # Tail-row masking: only possible (statically) when batch % tb != 0, and only
    # executed on the last grid step. All math above is row-local, so garbage pad
    # rows cannot contaminate valid rows; a single per-row select zeroes them here.
    if batch % tb != 0:
        def _mask_tail(c):
            rows_left = batch - i * tb
            row_ids = jax.lax.broadcasted_iota(jnp.int32, (tb, 1), 0)
            return jnp.where(row_ids < rows_left, c, 0.0)

        contrib = jax.lax.cond(
            i == pl.num_programs(0) - 1, _mask_tail, lambda c: c, contrib)

    out_ref[0] = jnp.sum(contrib, axis=0, keepdims=True)        # (1, C) lane-dense partial


def _sublane_multiple(*dtypes):
    worst = min(jnp.dtype(d).itemsize for d in dtypes)
    return {4: 8, 2: 16, 1: 32}.get(worst, 8)


def _vmem_capacity_bytes():
    try:
        return int(pltpu.get_tpu_info().vmem_capacity_bytes)
    except Exception:
        return 128 << 20  # conservative v5e/v6e default


def softmax_ce_logits(logits, labels, *, tb=None, target_block_bytes=None):
    """Pallas equivalent of SoftmaxCELogits.forward(logits, labels, dim=-1)."""
    B, C = logits.shape
    assert labels.shape == (B, C), (labels.shape, (B, C))

    mult = _sublane_multiple(logits.dtype, labels.dtype)
    in_itemsize = jnp.dtype(logits.dtype).itemsize + jnp.dtype(labels.dtype).itemsize

    vmem_cap = _vmem_capacity_bytes()
    small_vmem = vmem_cap <= (64 << 20)  # v7x-class parts

    if target_block_bytes is None:
        # ~1 MiB tiles already sit near the HBM roofline; keep 2 MiB only where VMEM
        # is plentiful.
        target_block_bytes = (1 << 20) if small_vmem else (2 << 20)

    # VMEM needed per row of tb: double-buffered inputs + ~4 full-tile f32 temps.
    per_row_vmem = 2 * C * in_itemsize + 4 * C * 4
    vmem_budget = (44 << 20) if small_vmem else (96 << 20)
    tb_cap = max(mult, (vmem_budget // per_row_vmem) // mult * mult)

    if tb is None:
        # Size the row-tile from the combined per-row HBM footprint of BOTH inputs.
        per_row_hbm = max(C * in_itemsize, 1)
        tb = max(mult, target_block_bytes // per_row_hbm)
        tb = (tb // mult) * mult
        tb = min(tb, tb_cap)
        tb = min(tb, B)  # tb == B (full array dim) is always a legal block
        num_blocks = -(-B // tb)
        # On 2-TC parts, prefer an even block count so the parallel axis balances.
        if small_vmem and num_blocks > 1 and num_blocks % 2 == 1:
            tb_even = -(-B // (num_blocks + 1))
            tb_even = -(-tb_even // mult) * mult
            if mult <= tb_even <= min(tb_cap, B) and (-(-B // tb_even)) % 2 == 0:
                tb = tb_even
                num_blocks = -(-B // tb)
    else:
        assert tb == B or (tb % mult == 0 and tb <= B), (tb, B, mult)
        num_blocks = -(-B // tb)

    # Double-buffered inputs + the ~4 full-tile f32 temps the kernel materializes.
    vmem_limit = int(2 * tb * C * in_itemsize + 4 * tb * C * 4 + (2 << 20))
    vmem_limit = max(vmem_limit, 16 << 20)
    vmem_limit = min(vmem_limit, (48 << 20) if small_vmem else (112 << 20))

    kernel = functools.partial(_ce_kernel, batch=B, tb=tb)

    partials = pl.pallas_call(
        kernel,
        out_shape=jax.ShapeDtypeStruct((num_blocks, 1, C), jnp.float32),
        grid_spec=pltpu.PrefetchScalarGridSpec(
            num_scalar_prefetch=0,
            grid=(num_blocks,),
            in_specs=[
                pl.BlockSpec((tb, C), lambda i: (i, 0)),
                pl.BlockSpec((tb, C), lambda i: (i, 0)),
            ],
            # One distinct, lane-dense output block per grid step -> parallel axis.
            out_specs=pl.BlockSpec((1, 1, C), lambda i: (i, 0, 0)),
        ),
        compiler_params=pltpu.CompilerParams(
            dimension_semantics=("parallel",),
            vmem_limit_bytes=vmem_limit,
        ),
    )(logits, labels)

    # Single cheap cross-lane / cross-block reduction outside the kernel.
    return jnp.sum(partials)


if __name__ == "__main__":
    key = jax.random.PRNGKey(0)
    k1, k2, k3, k4 = jax.random.split(key, 4)

    # Case 1: small even batch (single block).
    B, C = 16, 128
    logits = jax.random.normal(k1, (B, C), dtype=jnp.float32)
    # "labels" are soft target distributions (the PyTorch module accepts any tensor).
    labels = jax.nn.softmax(jax.random.normal(k2, (B, C), dtype=jnp.float32), axis=-1)
    loss = jax.block_until_ready(softmax_ce_logits(logits, labels))
    ref = -jnp.sum(labels * jax.nn.log_softmax(logits, axis=-1))
    assert jnp.allclose(loss, ref, rtol=1e-5, atol=1e-5), (loss, ref)

    # Case 2: ragged batch with a forced small tile to exercise the last-step-only
    # tail masking and the multi-block parallel partial-output path.
    B2 = 20
    logits2 = jax.random.normal(k3, (B2, C), dtype=jnp.float32)
    labels2 = jax.nn.softmax(jax.random.normal(k4, (B2, C), dtype=jnp.float32), axis=-1)
    loss2 = jax.block_until_ready(softmax_ce_logits(logits2, labels2, tb=8))
    ref2 = -jnp.sum(labels2 * jax.nn.log_softmax(logits2, axis=-1))
    assert jnp.allclose(loss2, ref2, rtol=1e-5, atol=1e-5), (loss2, ref2)

    print("KERNEL_OK")
</pallas_src>

<mosaic_0001>
module attributes {stable_mosaic.version = 11 : i64} {
  func.func @_ce_kernel(%arg0: i32, %arg1: memref<16x128xf32, #tpu.memory_space<vmem>>, %arg2: memref<16x128xf32, #tpu.memory_space<vmem>>, %arg3: memref<1x1x128xf32, #tpu.memory_space<vmem>>) attributes {dimension_semantics = [#tpu.dimension_semantics<parallel>], iteration_bounds = array<i64: 1>, scalar_prefetch = 0 : i64, scratch_operands = 0 : i64, tpu.core_type = #tpu.core_type<tc>, window_params = [{transform_indices = @transform_0, window_bounds = array<i64: 16, 128>}, {transform_indices = @transform_1, window_bounds = array<i64: 16, 128>}, {transform_indices = @transform_2, window_bounds = array<i64: 1, 1, 128>}]} {
    %c0 = arith.constant 0 : index
    %c0_0 = arith.constant 0 : index
    %0 = vector.load %arg1[%c0, %c0_0] : memref<16x128xf32, #tpu.memory_space<vmem>>, vector<16x128xf32>
    %cst = arith.constant dense<0xFF800000> : vector<16xf32>
    %1 = vector.multi_reduction <maximumf>, %0, %cst [1] : vector<16x128xf32> to vector<16xf32>
    %2 = vector.shape_cast %1 : vector<16xf32> to vector<16x1xf32>
    %3 = vector.broadcast %2 : vector<16x1xf32> to vector<16x128xf32>
    %4 = arith.subf %0, %3 : vector<16x128xf32>
    %5 = math.exp %4 : vector<16x128xf32>
    %cst_1 = arith.constant dense<0.000000e+00> : vector<16xf32>
    %6 = vector.multi_reduction <add>, %5, %cst_1 [1] : vector<16x128xf32> to vector<16xf32>
    %7 = vector.shape_cast %6 : vector<16xf32> to vector<16x1xf32>
    %8 = math.log %7 : vector<16x1xf32>
    %9 = arith.addf %8, %2 : vector<16x1xf32>
    %c0_2 = arith.constant 0 : index
    %c0_3 = arith.constant 0 : index
    %10 = vector.load %arg2[%c0_2, %c0_3] : memref<16x128xf32, #tpu.memory_space<vmem>>, vector<16x128xf32>
    %11 = vector.broadcast %9 : vector<16x1xf32> to vector<16x128xf32>
    %12 = arith.subf %11, %0 : vector<16x128xf32>
    %13 = arith.mulf %10, %12 : vector<16x128xf32>
    %cst_4 = arith.constant dense<0.000000e+00> : vector<128xf32>
    %14 = vector.multi_reduction <add>, %13, %cst_4 [0] : vector<16x128xf32> to vector<128xf32>
    %15 = vector.shape_cast %14 : vector<128xf32> to vector<1x128xf32>
    %c0_5 = arith.constant 0 : index
    %c0_6 = arith.constant 0 : index
    %c0_7 = arith.constant 0 : index
    %16 = vector.load %arg3[%c0_5, %c0_6, %c0_7] : memref<1x1x128xf32, #tpu.memory_space<vmem>>, vector<1x1x128xf32>
    %17 = vector.shape_cast %16 : vector<1x1x128xf32> to vector<1x128xf32>
    %18 = vector.shape_cast %15 : vector<1x128xf32> to vector<1x1x128xf32>
    tpu.vector_store %arg3[%c0_5, %c0_6, %c0_7], %18 {strides = array<i32>} : memref<1x1x128xf32, #tpu.memory_space<vmem>>, vector<1x1x128xf32>,
    return
  }
  func.func @transform_0(%arg0: i32) -> (i32, i32) {
    %c0_i32 = arith.constant 0 : i32
    %c0_i32_0 = arith.constant 0 : i32
    return %arg0, %c0_i32 : i32, i32
  }
  func.func @transform_1(%arg0: i32) -> (i32, i32) {
    %c0_i32 = arith.constant 0 : i32
    %c0_i32_0 = arith.constant 0 : i32
    return %arg0, %c0_i32 : i32, i32
  }
  func.func @transform_2(%arg0: i32) -> (i32, i32, i32) {
    %c0_i32 = arith.constant 0 : i32
    %c0_i32_0 = arith.constant 0 : i32
    %c0_i32_1 = arith.constant 0 : i32
    return %arg0, %c0_i32, %c0_i32_0 : i32, i32, i32
  }
}

</mosaic_0001>

<bundles_post_ra>
// kernel: tpu_custom_call.1
= control target key start
LH: loop header
LB: loop body
LE: loop exit
PB: predicated region body
PF: predicated region fallthrough
CT: control target
= control target key end

     0   :  { %7 = vsyncpa [#allocation3], 0  ;;  %s233_s0 = inlined_call_operand.hbm [shape: f32[16,128], index: 0, kind: input, shape index: {}]   ;;  %s234_s1 = inlined_call_operand.hbm [shape: f32[16,128], index: 1, kind: input, shape index: {}]   ;;  %s235_s2 = inlined_call_operand.hbm [shape: f32[1,1,128], index: 2, kind: output, shape index: {}]  }
   0x1   :  { %8 = vsyncpa [#allocation6], 0 }
   0x2   :  { %9 = vsyncpa [#allocation4], 0  ;;  %s177_s9 = smov [#allocation2]   ;;  %s105_s13 = scalar_lea.hbm %s233_s0, 256 }
   0x3   :  { %s15_s10 = sshll.u32 %s177_s9, 4  ;;  %p106_p0 = scmp.ne.s32.totalorder %s233_s0, %s105_s13  ;;  %s16_s10 = int_to_ptr.vmem [resolvable:$true] %s15_s10 }
   0x4   :  { %p109_p1 = scmp.lt.u32.totalorder %s105_s13, %s233_s0 }
   0x6   :  { %p111_p2 = pnand %p109_p1, %p106_p0 }
   0x8   :  { %114 = shalt.err (!%p111_p2)
}
   0x9   :  { %s115_s18 = scalar_lea.vmem %s16_s10, 256  ;;  %p120_p4 = scmp.lt.s32.totalorder %s16_s10, %s16_s10 }
   0xa   :  { %p116_p3 = scmp.ne.s32.totalorder %s16_s10, %s115_s18  ;;  %p121_p5 = scmp.lt.s32.totalorder %s115_s18, %s115_s18 }
   0xc   :  { %p122_p6 = por %p121_p5, %p120_p4 }
   0xe   :  { %p123_p7 = pnand %p122_p6, %p116_p3 }
  0x10   :  { %126 = shalt.err (!%p123_p7)
}
  0x11   :  { %s178_s19 = smov 128   ;;  %s179_s20 = smov 8  }
  0x12   :  { %21 = dma.hbm_to_vmem [thread:$0]  %s233_s0, 256, %s16_s10, [#allocation3], %s178_s19, %s178_s19, %s179_s20  }
  0x13   :  { %s180_s23 = smov [#allocation5]   ;;  %s127_s27 = scalar_lea.hbm %s234_s1, 256 }
  0x14   :  { %s27_s24 = sshll.u32 %s180_s23, 4  ;;  %p128_p8 = scmp.ne.s32.totalorder %s234_s1, %s127_s27  ;;  %s28_s24 = int_to_ptr.vmem [resolvable:$true] %s27_s24 }
  0x15   :  { %p131_p9 = scmp.lt.u32.totalorder %s127_s27, %s234_s1 }
  0x17   :  { %p133_p10 = pnand %p131_p9, %p128_p8 }
  0x19   :  { %136 = shalt.err (!%p133_p10)
}
  0x1a   :  { %s137_s4 = scalar_lea.vmem %s28_s24, 256  ;;  %p142_p12 = scmp.lt.s32.totalorder %s28_s24, %s28_s24 }
  0x1b   :  { %p138_p11 = scmp.ne.s32.totalorder %s28_s24, %s137_s4  ;;  %p143_p13 = scmp.lt.s32.totalorder %s137_s4, %s137_s4 }
  0x1d   :  { %p144_p0 = por %p143_p13, %p142_p12 }
  0x1f   :  { %p145_p1 = pnand %p144_p0, %p138_p11 }
  0x21   :  { %148 = shalt.err (!%p145_p1)
}
  0x22   :  { %33 = dma.hbm_to_vmem [thread:$0]  %s234_s1, 256, %s28_s24, [#allocation6], %s178_s19, %s178_s19, %s179_s20  }
  0x23   :  { %171 = dma.done.wait [#allocation3], 256  }
  0x24   :  { %172 = vsyncadd [#allocation3], 4294967040 }
  0x25   :  { %173 = dma.done.wait [#allocation6], 256  }
  0x26   :  { %174 = vsyncadd [#allocation6], 4294967040  ;;  %v40_v0 = vld [vmem:[#allocation2] sm:$0xff]  ;;  %v41_v1 = vld [vmem:[#allocation2 + $0x8] sm:$0xff]  ;;  %s181_s1 = smov [#allocation7]  }
  0x27   :  { %42 = vmax.xlane.f32.xlu0 %v40_v0  ;;  %v62_v19 = vld [vmem:[#allocation5] sm:$0xff]  ;;  %v63_v20 = vld [vmem:[#allocation5 + $0x8] sm:$0xff]  ;;  %s82_s6 = sshll.u32 %s181_s1, 4  ;;  %s83_s6 = int_to_ptr.vmem [resolvable:$true] %s82_s6 }
  0x28   :  { %s149_s7 = scalar_lea.vmem %s83_s6, 16  ;;  %s153_s8 = scalar_lea.vmem %s83_s6, 32 }
  0x29   :  { %p150_p2 = scmp.ne.s32.totalorder %s83_s6, %s149_s7  ;;  %p154_p3 = scmp.lt.s32.totalorder %s83_s6, %s83_s6 }
  0x2a   :  { %p155_p4 = scmp.lt.s32.totalorder %s153_s8, %s149_s7 }
  0x2b   :  { %44 = vmax.xlane.f32.xlu0 %v41_v1 }
  0x2c   :  { %p156_p5 = por %p155_p4, %p154_p3 }
  0x2e   :  { %p157_p6 = pnand %p156_p5, %p150_p2 }
  0xb4   :  { %v43_v2 = vpop.xlane.xlu0 %42 }
  0xb5   :  { %v46_v3 = vsub.f32 %v40_v0, %v43_v2 }
  0xb7   :  { %v48_v4 = vmul.f32 1.442695, %v46_v3 }
  0xb8   :  { %v45_v5 = vpop.xlane.xlu0 %44 }
  0xb9   :  { %v47_v6 = vsub.f32 %v41_v1, %v45_v5  ;;  %97 = vpow2.f32 %v48_v4 }
  0xbb   :  { %v50_v7 = vmul.f32 1.442695, %v47_v6 }
  0xbd   :  { %99 = vpow2.f32 %v50_v7 }
  0xc3   :  { %v98_v8 = vpop.eup %97 }
  0xc4   :  { %52 = vadd.xlane.f32.xlu1 %v98_v8 }
  0xc7   :  { %v100_v9 = vpop.eup %99 }
  0xc8   :  { %54 = vadd.xlane.f32.xlu1 %v100_v9 }
 0x151   :  { %v53_v10 = vpop.xlane.xlu1 %52 }
 0x152   :  { %101 = vlog2.f32 %v53_v10 }
 0x155   :  { %v55_v11 = vpop.xlane.xlu1 %54 }
 0x156   :  { %103 = vlog2.f32 %v55_v11 }
 0x15c   :  { %v102_v12 = vpop.eup %101 }
 0x15d   :  { %v57_v13 = vmul.f32 0.6931472, %v102_v12 }
 0x15f   :  { %v60_v14 = vadd.f32 %v57_v13, %v43_v2 }
 0x160   :  { %v104_v15 = vpop.eup %103 }
 0x161   :  { %v59_v16 = vmul.f32 0.6931472, %v104_v15  ;;  %v64_v17 = vsub.f32 %v60_v14, %v40_v0 }
 0x163   :  { %v61_v18 = vadd.f32 %v59_v16, %v45_v5  ;;  %v66_v22 = vmul.f32 %v64_v17, %v62_v19 }
 0x165   :  { %v65_v21 = vsub.f32 %v61_v18, %v41_v1 }
 0x167   :  { %v67_v23 = vmul.f32 %v65_v21, %v63_v20 }
 0x169   :  { %v68_v24 = vadd.f32 %v67_v23, %v66_v22 }
 0x16b   :  { %v69_v25 = vrot.slane %v68_v24, 4 }
 0x16d   :  { %v70_v26 = vadd.f32 %v69_v25, %v68_v24 }
 0x16f   :  { %v71_v27 = vrot.slane %v70_v26, 2 }
 0x171   :  { %v72_v28 = vadd.f32 %v71_v27, %v70_v26 }
 0x173   :  { %v73_v29 = vrot.slane %v72_v28, 1 }
 0x175   :  { %v74_v30 = vadd.f32 %v73_v29, %v72_v28 }
 0x177   :  { %75 = vst [vmem:[#allocation7] sm:$0x1] %v74_v30 }
 0x178   :  { %160 = shalt.err (!%p157_p6)
}
 0x179   :  { %s161_s11 = scalar_lea.hbm %s235_s2, 16 }
 0x17a   :  { %p162_p7 = scmp.ne.s32.totalorder %s235_s2, %s161_s11  ;;  %p165_p8 = scmp.lt.u32.totalorder %s161_s11, %s235_s2 }
 0x17c   :  { %p167_p9 = pnand %p165_p8, %p162_p7 }
 0x17e   :  { %170 = shalt.err (!%p167_p9)
}
 0x17f   :  { %85 = dma.vmem_to_hbm [thread:$0]  %s83_s6, 16, %s235_s2, [#allocation4]  }
 0x180   :  { %175 = dma.done.wait [#allocation4], 16  }
 0x181   :  { %176 = vsyncadd [#allocation4], 4294967280 }
 0x182   :  { %89 = vsyncpa [#allocation3], 1 }
 0x183   :  { %90 = vsyncpa [#allocation6], 1 }
 0x184   :  { %91 = vsyncpa [#allocation4], 1 }

</bundles_post_ra>
